<compile_context>
chip_gen: v5e
topology: v5e:2x2
jax: 0.10.0
libtpu: 0.0.40
codegen_flags: <defaults>
</compile_context>

<pallas_src>
import jax
import jax.numpy as jnp
from jax.experimental import pallas as pl
from jax.experimental.pallas import tpu as pltpu


def _gcn2_kernel(a_ref, x_ref, w1_ref, b1_ref, w2_ref, b2_ref, o_ref):
    """One 128-lane chunk of the lane-packed batch: fused 2-layer GCN forward.

    a_ref  : (N, N)   normalized adjacency (grid-invariant, resident in VMEM)
    x_ref  : (N, C)   packed feature chunk, C a multiple of 128
    w*_ref : (C, C)   block-diagonal weights (g copies of the Fp x Fp weight)
    b*_ref : (1, C)   tiled biases (always f32)
    o_ref  : (N, C)   output chunk (f32)
    """
    a = a_ref[...]
    mxu_dt = a.dtype  # f32 (exact) or bf16 (fast); accumulation always f32

    # layer 1: (X @ W1), aggregate with A_hat, bias + tanh in f32
    xw = jnp.dot(x_ref[...], w1_ref[...], preferred_element_type=jnp.float32)
    h1 = jnp.tanh(
        jnp.dot(a, xw.astype(mxu_dt), preferred_element_type=jnp.float32) + b1_ref[...]
    )
    # layer 2
    hw = jnp.dot(h1.astype(mxu_dt), w2_ref[...], preferred_element_type=jnp.float32)
    out = jnp.dot(a, hw.astype(mxu_dt), preferred_element_type=jnp.float32) + b2_ref[...]
    o_ref[...] = out.astype(o_ref.dtype)


def h_derivative_x_pallas(a_hat, x, w1, b1, w2, b2, *, mxu_dtype=jnp.float32):
    """Fused 2-layer GCN forward for a batch of feature matrices.

    a_hat : (N, N)    dense normalized adjacency (shared across the batch)
    x     : (B, N, F) node features per batch element
    w1,w2 : (F, F)    layer weights
    b1,b2 : (1, F)    layer biases
    mxu_dtype : dtype of the MXU operands (jnp.float32 exact, jnp.bfloat16 fast);
                accumulation / bias / tanh are always f32.
    returns (B, N, F) float32
    """
    b_sz, n, f = x.shape

    # ---- lane packing --------------------------------------------------------
    # xp[n, b*Fp + j] = x[b, n, j]; each grid step handles one `chunk`-wide slab
    # of lanes = g whole batch elements, with a g-way block-diagonal weight.
    if f <= 128:
        fp = 1 << (f - 1).bit_length()        # next power of two -> divides 128
        g = 128 // fp                         # batch elements per 128-lane chunk
    else:
        fp = pl.cdiv(f, 128) * 128            # lane-aligned feature width
        g = 1                                 # one batch element per chunk
    chunk = g * fp
    bp = pl.cdiv(b_sz, g) * g                 # pad batch to a whole number of chunks
    num_chunks = (bp * fp) // chunk

    # Zero padding is exact: padded W rows/cols are zero (zero pre-activation,
    # tanh(0)=0, zero layer-2 contribution) and padded batch columns never mix
    # with real ones (block-diagonal weights; A_hat only mixes rows/nodes).
    xpad = jnp.pad(x, ((0, bp - b_sz), (0, 0), (0, fp - f)))
    xp = jnp.transpose(xpad, (1, 0, 2)).reshape(n, bp * fp)

    w1p = jnp.pad(w1, ((0, fp - f), (0, fp - f)))
    w2p = jnp.pad(w2, ((0, fp - f), (0, fp - f)))
    b1p = jnp.pad(b1, ((0, 0), (0, fp - f)))
    b2p = jnp.pad(b2, ((0, 0), (0, fp - f)))

    # Per-chunk block-diagonal weights (g diagonal copies) and lane-tiled biases.
    eye_g = jnp.eye(g, dtype=w1.dtype)
    w1c = jnp.einsum("gh,ij->gihj", eye_g, w1p).reshape(chunk, chunk)
    w2c = jnp.einsum("gh,ij->gihj", eye_g, w2p).reshape(chunk, chunk)
    b1c = jnp.tile(b1p, (1, g)).astype(jnp.float32)
    b2c = jnp.tile(b2p, (1, g)).astype(jnp.float32)

    # MXU operands (optionally bf16); biases / activations stay f32.
    a_in = a_hat.astype(mxu_dtype)
    xp = xp.astype(mxu_dtype)
    w1c = w1c.astype(mxu_dtype)
    w2c = w2c.astype(mxu_dtype)

    # ---- VMEM budget ---------------------------------------------------------
    # Default pipeline double-buffers every operand (grid-invariant ones included).
    itemsize = jnp.dtype(mxu_dtype).itemsize
    resident = (n * n + 2 * chunk * chunk) * itemsize + 2 * chunk * 4
    streamed = n * chunk * (itemsize + 4)      # packed-x chunk in + f32 out chunk
    vmem_limit = int(min(max(2 * (resident + 2 * streamed) + (4 << 20), 32 << 20),
                         112 << 20))

    out_packed = pl.pallas_call(
        _gcn2_kernel,
        out_shape=jax.ShapeDtypeStruct((n, bp * fp), jnp.float32),
        grid=(num_chunks,),
        in_specs=[
            # Grid-invariant blocks (constant index): DMA'd once, kept resident.
            pl.BlockSpec((n, n), lambda c: (0, 0)),           # A_hat
            pl.BlockSpec((n, chunk), lambda c: (0, c)),       # packed X chunk
            pl.BlockSpec((chunk, chunk), lambda c: (0, 0)),   # W1 (block-diagonal)
            pl.BlockSpec((1, chunk), lambda c: (0, 0)),       # b1 (lane-tiled)
            pl.BlockSpec((chunk, chunk), lambda c: (0, 0)),   # W2 (block-diagonal)
            pl.BlockSpec((1, chunk), lambda c: (0, 0)),       # b2 (lane-tiled)
        ],
        out_specs=pl.BlockSpec((n, chunk), lambda c: (0, c)),
        compiler_params=pltpu.CompilerParams(
            dimension_semantics=("parallel",),   # chunks independent: v7x 2-TC split
            vmem_limit_bytes=vmem_limit,
        ),
    )(a_in, xp, w1c, b1c, w2c, b2c)

    # Unpack lanes -> (B, N, F), drop feature/batch padding.
    out = jnp.transpose(out_packed.reshape(n, bp, fp), (1, 0, 2))
    return out[:b_sz, :, :f]


def build_normalized_adjacency(edge_index, num_nodes, edge_weight=None,
                               dtype=jnp.float32):
    """Dense D^{-1/2}(A+I)D^{-1/2} from a (2, E) edge_index (plain-JAX glue).

    Mirrors PyG gcn_norm: edge weights are scatter-added (duplicate edges
    accumulate) and self-loops are added only for nodes missing one.
    """
    src, dst = edge_index[0], edge_index[1]
    if edge_weight is None:
        edge_weight = jnp.ones(src.shape, dtype=dtype)
    a = jnp.zeros((num_nodes, num_nodes), dtype=dtype)
    # PyG convention: message flows src -> dst, aggregation row = dst.
    a = a.at[dst, src].add(edge_weight)
    diag = jnp.diagonal(a)
    a = a + jnp.diag(jnp.where(diag > 0, 0.0, 1.0).astype(dtype))
    deg = jnp.sum(a, axis=1)
    d_inv_sqrt = jnp.where(deg > 0, 1.0 / jnp.sqrt(deg), 0.0)
    return d_inv_sqrt[:, None] * a * d_inv_sqrt[None, :]


def reference_forward(a_hat, x, w1, b1, w2, b2):
    """Pure-JAX reference: batched 2-layer GCN."""
    h1 = jnp.tanh(jnp.einsum("ij,bjf->bif", a_hat, x @ w1) + b1)
    return jnp.einsum("ij,bjf->bif", a_hat, h1 @ w2) + b2


if __name__ == "__main__":
    batch = 8          # -> 2 packed 128-lane chunks -> 2 parallel grid steps
    num_nodes = 16
    size_in = 32       # self.dim / feature width of both GCNConv layers

    key = jax.random.PRNGKey(0)
    kx, kw1, kw2 = jax.random.split(key, 3)

    # Deterministic synthetic graph: bidirectional ring on num_nodes nodes.
    nodes = jnp.arange(num_nodes, dtype=jnp.int32)
    nxt = (nodes + 1) % num_nodes
    edge_index = jnp.stack(
        [jnp.concatenate([nodes, nxt]), jnp.concatenate([nxt, nodes])], axis=0
    )  # (2, 2*num_nodes)

    # Node features: a batch of independent feature matrices.
    x = jax.random.normal(kx, (batch, num_nodes, size_in), dtype=jnp.float32)

    # Deterministic glorot-style weights; PyG default bias init is zeros.
    limit = (6.0 / (size_in + size_in)) ** 0.5
    w1 = jax.random.uniform(kw1, (size_in, size_in), jnp.float32, -limit, limit)
    w2 = jax.random.uniform(kw2, (size_in, size_in), jnp.float32, -limit, limit)
    b1 = jnp.zeros((1, size_in), dtype=jnp.float32)
    b2 = jnp.zeros((1, size_in), dtype=jnp.float32)

    a_hat = build_normalized_adjacency(edge_index, num_nodes)
    ref = reference_forward(a_hat, x, w1, b1, w2, b2)

    # Exact path: f32 MXU operands, f32 accumulation.
    out = h_derivative_x_pallas(a_hat, x, w1, b1, w2, b2)
    out = jax.block_until_ready(out)
    assert out.shape == (batch, num_nodes, size_in)
    assert jnp.allclose(out, ref, atol=1e-5, rtol=1e-5)

    # Fast path: bf16 MXU operands (f32 accumulation, f32 bias/tanh) — looser tol.
    out_bf16 = h_derivative_x_pallas(a_hat, x, w1, b1, w2, b2, mxu_dtype=jnp.bfloat16)
    out_bf16 = jax.block_until_ready(out_bf16)
    assert out_bf16.shape == (batch, num_nodes, size_in)
    assert jnp.allclose(out_bf16, ref, atol=1e-1, rtol=1e-1)

    print("KERNEL_OK")
</pallas_src>

<mosaic_0001>
module attributes {stable_mosaic.version = 11 : i64} {
  func.func @_gcn2_kernel(%arg0: i32, %arg1: memref<16x16xf32, #tpu.memory_space<vmem>>, %arg2: memref<16x128xf32, #tpu.memory_space<vmem>>, %arg3: memref<128x128xf32, #tpu.memory_space<vmem>>, %arg4: memref<1x128xf32, #tpu.memory_space<vmem>>, %arg5: memref<128x128xf32, #tpu.memory_space<vmem>>, %arg6: memref<1x128xf32, #tpu.memory_space<vmem>>, %arg7: memref<16x128xf32, #tpu.memory_space<vmem>>) attributes {dimension_semantics = [#tpu.dimension_semantics<parallel>], iteration_bounds = array<i64: 2>, scalar_prefetch = 0 : i64, scratch_operands = 0 : i64, tpu.core_type = #tpu.core_type<tc>, window_params = [{pipeline_mode = #tpu.pipeline_mode<synchronous>, transform_indices = @transform_0, window_bounds = array<i64: 16, 16>}, {transform_indices = @transform_1, window_bounds = array<i64: 16, 128>}, {pipeline_mode = #tpu.pipeline_mode<synchronous>, transform_indices = @transform_2, window_bounds = array<i64: 128, 128>}, {pipeline_mode = #tpu.pipeline_mode<synchronous>, transform_indices = @transform_3, window_bounds = array<i64: 1, 128>}, {pipeline_mode = #tpu.pipeline_mode<synchronous>, transform_indices = @transform_4, window_bounds = array<i64: 128, 128>}, {pipeline_mode = #tpu.pipeline_mode<synchronous>, transform_indices = @transform_5, window_bounds = array<i64: 1, 128>}, {transform_indices = @transform_6, window_bounds = array<i64: 16, 128>}]} {
    %c0 = arith.constant 0 : index
    %c0_0 = arith.constant 0 : index
    %0 = vector.load %arg1[%c0, %c0_0] : memref<16x16xf32, #tpu.memory_space<vmem>>, vector<16x16xf32>
    %c0_1 = arith.constant 0 : index
    %c0_2 = arith.constant 0 : index
    %1 = vector.load %arg2[%c0_1, %c0_2] : memref<16x128xf32, #tpu.memory_space<vmem>>, vector<16x128xf32>
    %c0_3 = arith.constant 0 : index
    %c0_4 = arith.constant 0 : index
    %2 = vector.load %arg3[%c0_3, %c0_4] : memref<128x128xf32, #tpu.memory_space<vmem>>, vector<128x128xf32>
    %cst = arith.constant dense<0.000000e+00> : vector<16x128xf32>
    %3 = tpu.matmul %1, %2, %cst {dimension_numbers = #tpu.dot_dimension_numbers<[1], [0], [0], [1], [0, 0, 1, 1], [], []>} : vector<16x128xf32>, vector<128x128xf32>, vector<16x128xf32> -> vector<16x128xf32>
    %cst_5 = arith.constant dense<0.000000e+00> : vector<16x128xf32>
    %4 = tpu.matmul %0, %3, %cst_5 {dimension_numbers = #tpu.dot_dimension_numbers<[1], [0], [0], [1], [0, 0, 1, 1], [], []>} : vector<16x16xf32>, vector<16x128xf32>, vector<16x128xf32> -> vector<16x128xf32>
    %c0_6 = arith.constant 0 : index
    %c0_7 = arith.constant 0 : index
    %5 = vector.load %arg4[%c0_6, %c0_7] : memref<1x128xf32, #tpu.memory_space<vmem>>, vector<1x128xf32>
    %6 = vector.broadcast %5 : vector<1x128xf32> to vector<16x128xf32>
    %7 = arith.addf %4, %6 : vector<16x128xf32>
    %8 = math.tanh %7 : vector<16x128xf32>
    %c0_8 = arith.constant 0 : index
    %c0_9 = arith.constant 0 : index
    %9 = vector.load %arg5[%c0_8, %c0_9] : memref<128x128xf32, #tpu.memory_space<vmem>>, vector<128x128xf32>
    %cst_10 = arith.constant dense<0.000000e+00> : vector<16x128xf32>
    %10 = tpu.matmul %8, %9, %cst_10 {dimension_numbers = #tpu.dot_dimension_numbers<[1], [0], [0], [1], [0, 0, 1, 1], [], []>} : vector<16x128xf32>, vector<128x128xf32>, vector<16x128xf32> -> vector<16x128xf32>
    %cst_11 = arith.constant dense<0.000000e+00> : vector<16x128xf32>
    %11 = tpu.matmul %0, %10, %cst_11 {dimension_numbers = #tpu.dot_dimension_numbers<[1], [0], [0], [1], [0, 0, 1, 1], [], []>} : vector<16x16xf32>, vector<16x128xf32>, vector<16x128xf32> -> vector<16x128xf32>
    %c0_12 = arith.constant 0 : index
    %c0_13 = arith.constant 0 : index
    %12 = vector.load %arg6[%c0_12, %c0_13] : memref<1x128xf32, #tpu.memory_space<vmem>>, vector<1x128xf32>
    %13 = vector.broadcast %12 : vector<1x128xf32> to vector<16x128xf32>
    %14 = arith.addf %11, %13 : vector<16x128xf32>
    %c0_14 = arith.constant 0 : index
    %c0_15 = arith.constant 0 : index
    %15 = vector.load %arg7[%c0_14, %c0_15] : memref<16x128xf32, #tpu.memory_space<vmem>>, vector<16x128xf32>
    tpu.vector_store %arg7[%c0_14, %c0_15], %14 {strides = array<i32>} : memref<16x128xf32, #tpu.memory_space<vmem>>, vector<16x128xf32>,
    return
  }
  func.func @transform_0(%arg0: i32) -> (i32, i32) {
    %c0_i32 = arith.constant 0 : i32
    %c0_i32_0 = arith.constant 0 : i32
    %c0_i32_1 = arith.constant 0 : i32
    return %c0_i32, %c0_i32_0 : i32, i32
  }
  func.func @transform_1(%arg0: i32) -> (i32, i32) {
    %c0_i32 = arith.constant 0 : i32
    %c0_i32_0 = arith.constant 0 : i32
    return %c0_i32, %arg0 : i32, i32
  }
  func.func @transform_2(%arg0: i32) -> (i32, i32) {
    %c0_i32 = arith.constant 0 : i32
    %c0_i32_0 = arith.constant 0 : i32
    %c0_i32_1 = arith.constant 0 : i32
    return %c0_i32, %c0_i32_0 : i32, i32
  }
  func.func @transform_3(%arg0: i32) -> (i32, i32) {
    %c0_i32 = arith.constant 0 : i32
    %c0_i32_0 = arith.constant 0 : i32
    %c0_i32_1 = arith.constant 0 : i32
    return %c0_i32, %c0_i32_0 : i32, i32
  }
  func.func @transform_4(%arg0: i32) -> (i32, i32) {
    %c0_i32 = arith.constant 0 : i32
    %c0_i32_0 = arith.constant 0 : i32
    %c0_i32_1 = arith.constant 0 : i32
    return %c0_i32, %c0_i32_0 : i32, i32
  }
  func.func @transform_5(%arg0: i32) -> (i32, i32) {
    %c0_i32 = arith.constant 0 : i32
    %c0_i32_0 = arith.constant 0 : i32
    %c0_i32_1 = arith.constant 0 : i32
    return %c0_i32, %c0_i32_0 : i32, i32
  }
  func.func @transform_6(%arg0: i32) -> (i32, i32) {
    %c0_i32 = arith.constant 0 : i32
    %c0_i32_0 = arith.constant 0 : i32
    return %c0_i32, %arg0 : i32, i32
  }
}

</mosaic_0001>

<bundles_post_ra>
// kernel: tpu_custom_call.1
= control target key start
LH: loop header
LB: loop body
LE: loop exit
PB: predicated region body
PF: predicated region fallthrough
CT: control target
= control target key end

     0   :  { %s1138_s0 = inlined_call_operand.hbm [shape: f32[16,16], index: 0, kind: input, shape index: {}]   ;;  %s1139_s1 = inlined_call_operand.hbm [shape: f32[16,256], index: 1, kind: input, shape index: {}]   ;;  %s1140_s2 = inlined_call_operand.hbm [shape: f32[128,128], index: 2, kind: input, shape index: {}]   ;;  %s1141_s3 = inlined_call_operand.vmem [shape: f32[1,128], index: 3, kind: input, shape index: {}]   ;;  %s1142_s4 = inlined_call_operand.hbm [shape: f32[128,128], index: 4, kind: input, shape index: {}]   ;;  %s1143_s5 = inlined_call_operand.vmem [shape: f32[1,128], index: 5, kind: input, shape index: {}]   ;;  %s1144_s6 = inlined_call_operand.hbm [shape: f32[16,256], index: 6, kind: output, shape index: {}]  }
   0x1   :  { %1147 = sst [smem:[#allocation18_spill]] %s1138_s0 }
   0x2   :  { %1148 = sst [smem:[#allocation19_spill]] %s1140_s2 }
   0x3   :  { %1149 = sst [smem:[#allocation20_spill]] %s1142_s4 }
   0x4   :  { %11 = vsyncpa [#allocation3], 0 }
   0x5   :  { %12 = vsyncpa [#allocation6], 0 }
   0x6   :  { %14 = vsyncpa [#allocation6 + $0x1], 0 }
   0x7   :  { %15 = vsyncpa [#allocation9], 0 }
   0x8   :  { %16 = vsyncpa [#allocation4], 0 }
   0x9   :  { %18 = vsyncpa [#allocation4 + $0x1], 0  ;;  %s942_s21 = smov 0   ;;  %s944_s22 = smov 0  }
   0xa   :  { %s946_s23 = smov 0   ;;  %s948_s24 = smov 0  }
   0xb LB: > { %s963_s25 = sadd.s32 4294967295, %s896_s24   ;;  %s587_s26 = sadd.s32 4294967294, %s896_s24   ;;  %s896_s24 = sphi %s948_s24, %s1163_s24   ;;  %s892_s23 = sphi %s946_s23, %s1167_s23   ;;  %s888_s22 = sphi %s944_s22, %s1166_s22   ;;  %s884_s21 = sphi %s942_s21, %s1165_s21  }
   0xc   : > { %s967_s27 = sadd.s32 1, %s896_s24   ;;  %s52_s28 = sadd.s32 1, %s892_s23 }
   0xd   : > { %1150 = sst [smem:[#allocation16_spill]] %s967_s27  ;;  %s49_s29 = ssub.s32 %s896_s24, %s967_s27 }
   0xe   : > { %p59_p0 = scmp.ne.s32.totalorder %s892_s23, %s888_s22  ;;  %p50_p1 = scmp.eq.s32.totalorder %s49_s29, 0 }
   0xf   : > { %p60_p2 = scmp.eq.s32.totalorder %s896_s24, 0  ;;  %p65_p3 = scmp.ne.s32.totalorder %s888_s22, %s884_s21 }
  0x10   : > { %p66_p4 = scmp.eq.s32.totalorder %s963_s25, 0  ;;  %p173_p7 = scmp.eq.s32.totalorder %s963_s25, 1 }
  0x11   : > { %s979_s30 = scalar_select %p50_p1, %s892_s23, %s52_s28  }
  0x12   : > { %p981_p5 = por %p60_p2, %p59_p0  ;;  %p987_p6 = por %p66_p4, %p65_p3 }
  0x13   : > { %1151 = sst [smem:[#allocation17_spill]] %s979_s30  ;;  %p179_p8 = scmp.eq.s32.totalorder %s587_s26, 1 }
  0x14   : > { %p588_p9 = scmp.ge.s32.totalorder %s896_s24, 1  ;;  %p186_p10 = scmp.lt.s32.totalorder %s896_s24, 3 }
  0x15   : > { %p994_p11 = por %p173_p7, %p59_p0  ;;  %p998_p12 = por %p179_p8, %p65_p3 }
  0x16   : > { %p1002_p13 = pnand %p588_p9, %p186_p10  ;;  %s1157_s2 = sld [smem:[#allocation19_spill]] }
  0x17   : > { %s898_s16 = smov [#allocation7]   ;;  %p646_p3 = scmp.lt.s32.totalorder %s896_s24, 2 }
  0x18   : > { %p625_p1 = pneg %p1002_p13  ;;  %s213_s17 = sshll.u32 %s898_s16, 4  ;;  %s214_s17 = int_to_ptr.vmem [resolvable:$true] %s213_s17 }
  0x19   : > { %s899_s18 = smov 128   ;;  %s900_s19 = smov 8  }
  0x1a   : > { %p1013_p0 = pnand %p625_p1, %p66_p4  ;;  %p1026_p7 = pnand %p646_p3, %p981_p5 }
  0x1b   : > { %s1160_s0 = sld [smem:[#allocation18_spill]]  ;;  %s901_s12 = smov [#allocation2]  }
  0x1c   : > { %s211_s14 = sshll.u32 %s1157_s2, 4  ;;  %s199_s13 = sshll.u32 %s901_s12, 4  ;;  %s212_s14 = int_to_ptr.hbm [resolvable:$true] %s211_s14  ;;  %s200_s13 = int_to_ptr.vmem [resolvable:$true] %s199_s13 }
  0x1d   : > { %631 = dma.hbm_to_vmem [thread:$0]  (!%p1013_p0), %s212_s14, 2048, %s214_s17, [#allocation6], %s899_s18, %s899_s18, %s900_s19  }
  0x1e   : > { %s1161_s4 = sld [smem:[#allocation20_spill]]  ;;  %s902_s7 = smov [#allocation8]  }
  0x1f   : > { %s230_s14 = sshll.u32 %s902_s7, 4  ;;  %s247_s17 = sand.u32 1, %s896_s24   ;;  %s231_s14 = int_to_ptr.vmem [resolvable:$true] %s230_s14 }
  0x20   : > { %s249_s26 = sand.u32 1, %s892_s23   ;;  %s594_s28 = sshll.u32 %s896_s24, 3 }
  0x21   : > { %s197_s29 = sshll.u32 %s1160_s0, 4  ;;  %s593_s2 = sshll.u32 %s249_s26, 4  ;;  %s198_s29 = int_to_ptr.hbm [resolvable:$true] %s197_s29 }
  0x22   : > { %628 = dma.hbm_to_vmem [thread:$0]  (!%p1013_p0), %s198_s29, 256, %s200_s13, [#allocation3], %s899_s18, %s899_s18, %s900_s19  }
  0x23   : > { %s255_s0 = scalar_lea.hbm %s1139_s1, %s594_s28  ;;  %s251_s29 = scalar_lea.vmem [#allocation5], %s593_s2 }
  0x24   : > { %s228_s30 = sshll.u32 %s1161_s4, 4  ;;  %s256_s4 = sshll.u32 %s255_s0, 4  ;;  %s229_s30 = int_to_ptr.hbm [resolvable:$true] %s228_s30  ;;  %s257_s4 = int_to_ptr.hbm [resolvable:$true] %s256_s4 }
  0x25   : > { %634 = dma.hbm_to_vmem [thread:$0]  (!%p1013_p0), %s229_s30, 2048, %s231_s14, [#allocation9], %s899_s18, %s899_s18, %s900_s19  }
  0x26   : > { %s258_s13 = sshll.u32 %s251_s29, 4  ;;  %s248_s7 = scalar_lea.sflag [#allocation6], %s247_s17  ;;  %s259_s13 = int_to_ptr.vmem [resolvable:$true] %s258_s13 }
  0x27   : > { %s788_s27 = sshra.s32 %s257_s4, 4  ;;  %p792_p8 = pneg %p1026_p7  ;;  %s789_s27 = int_to_ptr.hbm [resolvable:$true] %s788_s27 }
  0x28   : > { %s790_s15 = scalar_lea.hbm %s789_s27, 16  ;;  %s795_s26 = scalar_lea.hbm %s1139_s1, 32 }
  0x29   : > { %p791_p5 = scmp.ne.s32.totalorder %s789_s27, %s790_s15  ;;  %p796_p1 = scmp.lt.s32.totalorder %s789_s27, %s1139_s1 }
  0x2a   : > { %p797_p0 = scmp.lt.s32.totalorder %s795_s26, %s790_s15 }
  0x2b   : > { %p793_p9 = pnand %p792_p8, %p791_p5 }
  0x2c   : > { %p798_p3 = por %p797_p0, %p796_p1 }
  0x2d   : > { %p794_p10 = pneg %p793_p9 }
  0x2f   : > { %p799_p2 = pnand %p798_p3, %p794_p10 }
  0x31   : > { %802 = shalt.err (!%p799_p2)
}
  0x32   : > { %s903_s0 = smov 256   ;;  %270 = sbr.rel (%p1002_p13) target bundleno = 658 (0x292), region = 44 }
  0x33   : > { %638 = dma.hbm_to_vmem [thread:$0]  (!%p1026_p7), %s257_s4, 256, %s259_s13, %s248_s7, %s903_s0, %s899_s18, %s900_s19  }
  0x37   : > { %863 = dma.done.wait (%p66_p4), [#allocation3], 256  }
  0x38   : > { %865 = vsyncadd (%p66_p4), [#allocation3], 4294967040  ;;  %s277_s27 = sand.u32 1, %s963_s25   ;;  %s279_s17 = sand.u32 1, %s888_s22  }
  0x39   : > { %s1074_s20 = sshll.u32 %s279_s17, 4  ;;  %s278_s4 = scalar_lea.sflag [#allocation6], %s277_s27 }
  0x3a   : > { %s281_s18 = scalar_lea.vmem [#allocation5], %s1074_s20 }
  0x3b   : > { %867 = dma.done.wait (%p987_p6), %s278_s4, 256  }
  0x3c   : > { %869 = vsyncadd (%p987_p6), %s278_s4, 4294967040 }
  0x3d   : > { %871 = dma.done.wait (%p66_p4), [#allocation6], 2048  }
  0x3e   : > { %873 = vsyncadd (%p66_p4), [#allocation6], 4294965248 }
  0x3f   : > { %875 = dma.done.wait (%p66_p4), [#allocation9], 2048  }
  0x40   : > { %877 = vsyncadd (%p66_p4), [#allocation9], 4294965248  ;;  %v340_v0 = vld [vmem:[#allocation7 + $0x78] sm:$0xff]  ;;  %v339_v1 = vld [vmem:[#allocation7 + $0x70] sm:$0xff]  ;;  %vm368_vm0 = vcmask 130048   ;;  %s606_s16 = sshll.u32 %s963_s25, 3 }
  0x41   : > { %341 = vmatpush.msra.mxu0 %v340_v0  ;;  %v338_v2 = vld [vmem:[#allocation7 + $0x68] sm:$0xff]  ;;  %v337_v3 = vld [vmem:[#allocation7 + $0x60] sm:$0xff]  ;;  %v336_v4 = vld [vmem:[#allocation7 + $0x58] sm:$0xff]  ;;  %s479_s7 = scalar_lea.hbm %s1144_s6, %s606_s16  ;;  %s320_s15 = scalar_lea.vmem [#allocation10], %s1074_s20 }
  0x42   : > { %v335_v5 = vld [vmem:[#allocation7 + $0x50] sm:$0xff]  ;;  %v334_v6 = vld [vmem:[#allocation7 + $0x48] sm:$0xff]  ;;  %v333_v7 = vld [vmem:[#allocation7 + $0x40] sm:$0xff]  ;;  %s480_s30 = sshll.u32 %s320_s15, 4  ;;  %s482_s14 = sshll.u32 %s479_s7, 4  ;;  %s481_s30 = int_to_ptr.vmem [resolvable:$true] %s480_s30  ;;  %s483_s14 = int_to_ptr.hbm [resolvable:$true] %s482_s14 }
  0x43   : > { %342 = vmatpush.msra.mxu0 %v339_v1  ;;  %v332_v8 = vld [vmem:[#allocation7 + $0x38] sm:$0xff]  ;;  %v331_v9 = vld [vmem:[#allocation7 + $0x30] sm:$0xff]  ;;  %v330_v10 = vld [vmem:[#allocation7 + $0x28] sm:$0xff]  ;;  %s469_s26 = scalar_lea.sflag [#allocation4], %s279_s17  ;;  %s832_s12 = sshra.s32 %s483_s14, 4  ;;  %s833_s12 = int_to_ptr.hbm [resolvable:$true] %s832_s12 }
  0x44   : > { %v329_v11 = vld [vmem:[#allocation7 + $0x20] sm:$0xff]  ;;  %v328_v12 = vld [vmem:[#allocation7 + $0x18] sm:$0xff]  ;;  %v327_v13 = vld [vmem:[#allocation7 + $0x10] sm:$0xff]  ;;  %s834_s25 = scalar_lea.hbm %s833_s12, 16  ;;  %s838_s27 = scalar_lea.hbm %s1144_s6, 32 }
  0x45   : > { %343 = vmatpush.msra.mxu0 %v338_v2  ;;  %v326_v14 = vld [vmem:[#allocation7 + $0x8] sm:$0xff]  ;;  %v325_v15 = vld [vmem:[#allocation7] sm:$0xff]  ;;  %v415_v18 = vld [vmem:[#allocation8 + $0x78] sm:$0xff]  ;;  %p835_p4 = scmp.ne.s32.totalorder %s833_s12, %s834_s25  ;;  %p839_p2 = scmp.lt.s32.totalorder %s833_s12, %s1144_s6 }
  0x46   : > { %v323_v16 = vld [vmem:[%s281_s18] sm:$0xff]  ;;  %v324_v17 = vld [vmem:[%s281_s18 + $0x8] sm:$0xff]  ;;  %416 = vmatpush.msra.mxu2 %v415_v18  ;;  %p840_p7 = scmp.lt.s32.totalorder %s838_s27, %s834_s25 }
  0x47   : > { %344 = vmatpush.msra.mxu0 %v337_v3  ;;  %v414_v19 = vld [vmem:[#allocation8 + $0x70] sm:$0xff]  ;;  %v413_v20 = vld [vmem:[#allocation8 + $0x68] sm:$0xff]  ;;  %v412_v21 = vld [vmem:[#allocation8 + $0x60] sm:$0xff]  ;;  %p836_p6 = pnand %p835_p4, %p994_p11 }
  0x48   : > { %417 = vmatpush.msra.mxu2 %v414_v19  ;;  %v411_v22 = vld [vmem:[#allocation8 + $0x58] sm:$0xff]  ;;  %v410_v23 = vld [vmem:[#allocation8 + $0x50] sm:$0xff]  ;;  %v409_v24 = vld [vmem:[#allocation8 + $0x48] sm:$0xff]  ;;  %p841_p5 = por %p840_p7, %p839_p2 }
  0x49   : > { %345 = vmatpush.msra.mxu0 %v336_v4  ;;  %v408_v26 = vld [vmem:[#allocation8 + $0x40] sm:$0xff]  ;;  %v407_v27 = vld [vmem:[#allocation8 + $0x38] sm:$0xff]  ;;  %v406_v28 = vld [vmem:[#allocation8 + $0x30] sm:$0xff]  ;;  %p837_p13 = pneg %p836_p6 }
  0x4a   : > { %418 = vmatpush.msra.mxu2 %v413_v20  ;;  %v405_v29 = vld [vmem:[#allocation8 + $0x28] sm:$0xff]  ;;  %v321_v31 = vld [vmem:[#allocation2] sm:$0xff]  ;;  %v322_v32 = vld [vmem:[#allocation2 + $0x8] sm:$0xff] }
  0x4b   : > { %346 = vmatpush.msra.mxu0 %v335_v5  ;;  %v404_v33 = vld [vmem:[#allocation8 + $0x20] sm:$0xff]  ;;  %v403_v34 = vld [vmem:[#allocation8 + $0x18] sm:$0xff]  ;;  %v402_v35 = vld [vmem:[#allocation8 + $0x10] sm:$0xff]  ;;  %p842_p8 = pnand %p841_p5, %p837_p13 }
  0x4c   : > { %419 = vmatpush.msra.mxu2 %v412_v21  ;;  %v401_v36 = vld [vmem:[#allocation8 + $0x8] sm:$0xff]  ;;  %v400_v37 = vld [vmem:[#allocation8] sm:$0xff]  ;;  %v692_v38 = vld [vmem:[%s1141_s3] ss:$0 sm:$0xff] }
  0x4d   : > { %347 = vmatpush.msra.mxu0 %v334_v6  ;;  %v693_v47 = vld [vmem:[%s1143_s5] ss:$0 sm:$0xff] }
  0x4e   : > { %420 = vmatpush.msra.mxu2 %v411_v22 }
  0x4f   : > { %348 = vmatpush.msra.mxu0 %v333_v7 }
  0x50   : > { %421 = vmatpush.msra.mxu2 %v410_v23 }
  0x51   : > { %349 = vmatpush.msra.mxu0 %v332_v8 }
  0x52   : > { %422 = vmatpush.msra.mxu2 %v409_v24 }
  0x53   : > { %350 = vmatpush.msra.mxu0 %v331_v9 }
  0x54   : > { %423 = vmatpush.msra.mxu2 %v408_v26 }
  0x55   : > { %351 = vmatpush.msra.mxu0 %v330_v10 }
  0x56   : > { %424 = vmatpush.msra.mxu2 %v407_v27 }
  0x57   : > { %352 = vmatpush.msra.mxu0 %v329_v11 }
  0x58   : > { %425 = vmatpush.msra.mxu2 %v406_v28 }
  0x59   : > { %353 = vmatpush.msra.mxu0 %v328_v12 }
  0x5a   : > { %426 = vmatpush.msra.mxu2 %v405_v29 }
  0x5b   : > { %354 = vmatpush.msra.mxu0 %v327_v13 }
  0x5c   : > { %427 = vmatpush.msra.mxu2 %v404_v33 }
  0x5d   : > { %355 = vmatpush.msra.mxu0 %v326_v14 }
  0x5e   : > { %428 = vmatpush.msra.mxu2 %v403_v34 }
  0x5f   : > { %356 = vmatpush.msra.mxu0 %v325_v15 }
  0x60   : > { %357 = vmatmul.f32.vlgmr.msra.gmra.mxu0 %v323_v16  ;;  %429 = vmatpush.msra.mxu2 %v402_v35 }
  0x62   : > { %430 = vmatpush.msra.mxu2 %v401_v36 }
  0x64   : > { %431 = vmatpush.msra.mxu2 %v400_v37 }
  0x68   : > { %360 = vmatmul.f32.gmra.mxu0 %v324_v17 }
  0xdd   : > { %v358_v25 = vpop.f32.mrf.mxu0 }
  0xe5   : > { %v361_v30 = vpop.f32.mrf.mxu0 }
  0xe6   : > { %389 = vmatpush.msra.mxu1 %v361_v30 }
  0xe8   : > { %390 = vmatpush.msra.mxu1 %v358_v25 }
  0xe9   : > { %601 = vmatmul.msk.f32.vlgmr.msra.gmra.mxu1 %vm368_vm0, %v321_v31 }
  0xf1   : > { %602 = vmatmul.msk.f32.gmra.mxu1 %vm368_vm0, %v322_v32 }
 0x166   : > { %v392_v39 = vpop.f32.mrf.mxu1 }
 0x167   : > { %v393_v40 = vadd.f32 %v692_v38, %v392_v39 }
 0x169   : > { %694 = vtanh.f32 %v393_v40 }
 0x16e   : > { %v395_v41 = vpop.f32.mrf.mxu1 }
 0x16f   : > { %v695_v42 = vpop.eup %694  ;;  %v396_v43 = vadd.f32 %v692_v38, %v395_v41 }
 0x170   : > { %432 = vmatmul.f32.vlgmr.msra.gmra.mxu2 %v695_v42 }
 0x171   : > { %696 = vtanh.f32 %v396_v43 }
 0x177   : > { %v697_v44 = vpop.eup %696 }
 0x178   : > { %435 = vmatmul.f32.gmra.mxu2 %v697_v44 }
 0x1f3   : > { %v433_v45 = vpop.f32.mrf.mxu2 }
 0x1fb   : > { %v436_v46 = vpop.f32.mrf.mxu2 }
 0x1fc   : > { %457 = vmatpush.msra.mxu3 %v436_v46 }
 0x1fe   : > { %458 = vmatpush.msra.mxu3 %v433_v45 }
 0x1ff   : > { %603 = vmatmul.msk.f32.vlgmr.msra.gmra.mxu3 %vm368_vm0, %v321_v31 }
 0x207   : > { %604 = vmatmul.msk.f32.gmra.mxu3 %vm368_vm0, %v322_v32 }
 0x282   : > { %v460_v48 = vpop.f32.mrf.mxu3 }
 0x283   : > { %v461_v49 = vadd.f32 %v693_v47, %v460_v48 }
 0x285   : > { %466 = vst [vmem:[%s320_s15] sm:$0xff] %v461_v49 }
 0x28a   : > { %v463_v50 = vpop.f32.mrf.mxu3 }
 0x28b   : > { %v464_v51 = vadd.f32 %v693_v47, %v463_v50 }
 0x28d   : > { %467 = vst [vmem:[%s320_s15 + $0x8] sm:$0xff] %v464_v51 }
 0x28e   : > { %845 = shalt.err (!%p842_p8)
}
 0x28f   : > { %s904_s17 = smov 128   ;;  %s905_s18 = smov 256  }
 0x290   : > { %s906_s8 = smov 8  }
 0x291   : > { %623 = dma.vmem_to_hbm [thread:$0]  (%p994_p11), %s481_s30, 256, %s483_s14, %s469_s26, %s904_s17, %s905_s18, %s906_s8  }
 0x292 PF: > { %s497_s11 = sand.u32 1, %s884_s21   ;;  %p1162_p9 = scmp.ge.s32.totalorder %s896_s24, 2 }
 0x293   : > { %s498_s19 = scalar_lea.sflag [#allocation4], %s497_s11 }
 0x294   : > { %p640_p10 = pnand %p1162_p9, %p998_p12 }
 0x296   : > { %p641_p1 = pneg %p640_p10 }
 0x298   : > { %879 = dma.done.wait (%p641_p1), %s498_s19, 256  }
 0x299   : > { %881 = vsyncadd (%p641_p1), %s498_s19, 4294967040  ;;  %s1163_s24 = sld [smem:[#allocation16_spill]]  ;;  %s1165_s21 = smov %s888_s22 }
 0x29a   : > { %s1164_s2 = sld [smem:[#allocation17_spill]]  ;;  %s1166_s22 = smov %s892_s23 }
 0x29f   : > { %p21_p0 = scmp.ge.s32.totalorder %s1163_s24, 4  }
 0x2a0   : > { %s1167_s23 = smov %s1164_s2 }
 0x2a1   :  { %23 = sbr.rel (!%p21_p0) target bundleno = 11 (0xb), region = 102 }
 0x2a6   :  { %504 = vsyncpa [#allocation3], 1 }
 0x2a7   :  { %506 = vsyncpa [#allocation3 + $0x1], 1 }
 0x2a8   :  { %507 = vsyncpa [#allocation6], 1 }
 0x2a9   :  { %509 = vsyncpa [#allocation6 + $0x1], 1 }
 0x2aa   :  { %510 = vsyncpa [#allocation9], 1 }
 0x2ab   :  { %511 = vsyncpa [#allocation4], 1 }
 0x2ac   :  { %513 = vsyncpa [#allocation4 + $0x1], 1 }

</bundles_post_ra>
